<compile_context>
chip_gen: v6e
topology: v6e:2x2x1
jax: 0.10.0
libtpu: 0.0.40
codegen_flags: <defaults>
</compile_context>

<pallas_src>
import functools

import jax
import jax.numpy as jnp
from jax.experimental import pallas as pl
from jax.experimental.pallas import tpu as pltpu


def _cfg_kernel(w1s_ref, b1_ref, emb_ref, x_ref, out_ref, *, Bt, C):
    """One grid step = a block of Bt samples x one lane chunk.

    w1s_ref : (B*C*C,) SMEM f32, w1s[b,o,c] = c_in[b] * W1[o,c]
    b1_ref  : (C,)     SMEM f32, per-output-channel bias
    emb_ref : (B*C,)   SMEM f32, guided CFG embedding per (sample, channel)
    x_ref   : (Bt, C, S, Lt) VMEM f32
    out_ref : (Bt, C, S, Lt) VMEM f32
    """
    b0 = pl.program_id(0) * Bt   # first global sample index of this block

    @pl.loop(0, Bt)
    def _(s):
        b = b0 + s
        base = b * (C * C)
        for o in range(C):
            # Channel mix: C scalar-broadcast FMAs on dense (S, Lt) slabs (VPU).
            acc = w1s_ref[base + o * C] * x_ref[s, 0]
            for c in range(1, C):
                acc = acc + w1s_ref[base + o * C + c] * x_ref[s, c]
            # bias + tanh (EUP) + guided CFG embedding; lane-dense store.
            # TODO(synk): on v7x the single EUP tanh slot may bind before HBM;
            # a bf16 tanh would double EUP throughput there (keep f32 on v5e).
            out_ref[s, o] = jnp.tanh(acc + b1_ref[o]) + emb_ref[b * C + o]


def _spatial_split(HW):
    """Split HW -> (S, L) so tiles present up to 8 full sublanes and a lane dim
    that is a multiple of 128 (unmasked stores)."""
    for s in (8, 4, 2, 1):
        if HW % s == 0 and (HW // s) % 128 == 0:
            return s, HW // s
    # TODO(synk): pad HW to a multiple of 128 for odd spatial sizes; this fallback
    # is correct but uses partially filled vregs / masked stores.
    return 1, HW


def _choose_lane_chunk(L, per_lane_bytes, target_bytes):
    """Largest lane chunk (multiple of 128 dividing L) with a per-sample slice
    <= target_bytes.  Falls back to the full L."""
    if per_lane_bytes * L <= target_bytes or L % 128 != 0:
        return L
    lt = max(128, (target_bytes // per_lane_bytes) // 128 * 128)
    while L % lt:
        lt -= 128
    return lt


_TARGET_BLOCK_BYTES = 4 << 20   # ~4 MiB blocks: double-buffered in+out stays <32 MiB,
                                # comfortably inside v7x's 64 MiB (and v5e/v6e's 128 MiB).


@jax.jit
def cfg_denoiser(x, sigma, uncond, cond, cond_scale, params):
    """x: (B,C,H,W) f32, sigma: (B,), uncond/cond: (B,S,D), cond_scale: float."""
    w1, w2, b1 = params
    B, C, H, W = x.shape
    HW = H * W

    S, L = _spatial_split(HW)
    per_lane_bytes = C * S * 4
    Lt = _choose_lane_chunk(L, per_lane_bytes, _TARGET_BLOCK_BYTES)
    num_l = L // Lt

    bytes_per_sample_blk = per_lane_bytes * Lt
    Bt = max(1, min(B, _TARGET_BLOCK_BYTES // bytes_per_sample_blk))
    while B % Bt:
        Bt -= 1
    if B >= 2 and (B // Bt) * num_l < 2:      # give v7x megacore >= 2 shards
        Bt = max(1, Bt // 2)
        while B % Bt:
            Bt -= 1
    num_b = B // Bt

    x = x.astype(jnp.float32)
    sigma = sigma.astype(jnp.float32)

    # ---- tiny per-sample preprocessing (hoisted; exact because the inner model is
    # linear in cond and the embedding is purely additive) -------------------------
    c_in = 1.0 / jnp.sqrt(sigma * sigma + 1.0)                        # (B,)
    w1s = (c_in[:, None, None] * w1[None, :, :]).reshape(B * C * C)   # (B*C*C,)

    u_mean = jnp.mean(uncond.astype(jnp.float32), axis=1)             # (B, D)
    c_mean = jnp.mean(cond.astype(jnp.float32), axis=1)               # (B, D)
    guided = u_mean + (c_mean - u_mean) * cond_scale                  # (B, D)
    emb = (guided @ w2).reshape(B * C)                                # (B*C,)
    b1f = b1.reshape(-1)                                              # (C,)

    x4 = x.reshape(B, C, S, L)              # contiguous reshape: no data movement

    smem = pl.BlockSpec(memory_space=pltpu.MemorySpace.SMEM)
    kernel = functools.partial(_cfg_kernel, Bt=Bt, C=C)

    out = pl.pallas_call(
        kernel,
        out_shape=jax.ShapeDtypeStruct((B, C, S, L), jnp.float32),
        grid_spec=pltpu.PrefetchScalarGridSpec(
            num_scalar_prefetch=0,
            grid=(num_b, num_l),
            in_specs=[
                smem,                                                     # w1s
                smem,                                                     # b1
                smem,                                                     # emb
                pl.BlockSpec((Bt, C, S, Lt), lambda j, l: (j, 0, 0, l)),  # x
            ],
            out_specs=pl.BlockSpec((Bt, C, S, Lt), lambda j, l: (j, 0, 0, l)),
        ),
        compiler_params=pltpu.CompilerParams(
            dimension_semantics=("parallel", "parallel"),
            vmem_limit_bytes=32 * 1024 * 1024),
    )(w1s, b1f, emb, x4)

    return out.reshape(B, C, H, W)


# ---------- pure-JAX reference reproducing the literal cat / chunk forward ----------
def _inner_model_ref(x_in, sigma_in, cond_in, params):
    w1, w2, b1 = params
    Btot, C, H, W = x_in.shape
    c_in = 1.0 / jnp.sqrt(sigma_in ** 2 + 1.0)
    xf = x_in.reshape(Btot, C, H * W) * c_in[:, None, None]
    h = jnp.tanh(jnp.einsum('oc,bcp->bop', w1, xf) + b1[None, :, :])
    emb = jnp.mean(cond_in, axis=1) @ w2                              # (Btot, C)
    return (h + emb[:, :, None]).reshape(Btot, C, H, W)


def cfg_denoiser_ref(x, sigma, uncond, cond, cond_scale, params):
    x_in = jnp.concatenate([x, x], axis=0)
    sigma_in = jnp.concatenate([sigma, sigma], axis=0)
    cond_in = jnp.concatenate([uncond, cond], axis=0)
    out = _inner_model_ref(x_in, sigma_in, cond_in, params)
    u, c = jnp.split(out, 2, axis=0)
    return u + (c - u) * cond_scale


if __name__ == "__main__":
    B, C, H, W = 2, 4, 16, 16
    SEQ, DIM = 8, 32
    cond_scale = 7.5

    key = jax.random.PRNGKey(0)
    kx, ks, ku, kc, kw1, kw2, kb1 = jax.random.split(key, 7)

    x = jax.random.normal(kx, (B, C, H, W), dtype=jnp.float32)
    sigma = jax.random.uniform(ks, (B,), dtype=jnp.float32, minval=0.5, maxval=5.0)
    uncond = jax.random.normal(ku, (B, SEQ, DIM), dtype=jnp.float32)
    cond = jax.random.normal(kc, (B, SEQ, DIM), dtype=jnp.float32)

    # deterministic synthetic inner-model parameters
    w1 = jax.random.normal(kw1, (C, C), dtype=jnp.float32) * 0.3
    w2 = jax.random.normal(kw2, (DIM, C), dtype=jnp.float32) * 0.3
    b1 = jax.random.normal(kb1, (C, 1), dtype=jnp.float32) * 0.1
    params = (w1, w2, b1)

    out = cfg_denoiser(x, sigma, uncond, cond, cond_scale, params)
    out = jax.block_until_ready(out)

    ref = cfg_denoiser_ref(x, sigma, uncond, cond, cond_scale, params)
    assert out.shape == (B, C, H, W)
    # slightly relaxed tolerance: the CFG combine is applied before the (linear)
    # embedding matmul, which reorders f32 rounding vs. the literal reference.
    assert jnp.allclose(out, ref, atol=1e-4, rtol=1e-4), "mismatch vs reference"

    print("KERNEL_OK")
</pallas_src>

<mosaic_0001>
module attributes {stable_mosaic.version = 11 : i64} {
  func.func @_cfg_kernel(%arg0: i32, %arg1: i32, %arg2: memref<32xf32, #tpu.memory_space<smem>>, %arg3: memref<4xf32, #tpu.memory_space<smem>>, %arg4: memref<8xf32, #tpu.memory_space<smem>>, %arg5: memref<1x4x2x128xf32, #tpu.memory_space<vmem>>, %arg6: memref<1x4x2x128xf32, #tpu.memory_space<vmem>>) attributes {dimension_semantics = [#tpu.dimension_semantics<parallel>, #tpu.dimension_semantics<parallel>], iteration_bounds = array<i64: 2, 1>, scalar_prefetch = 0 : i64, scratch_operands = 0 : i64, tpu.core_type = #tpu.core_type<tc>, window_params = [{transform_indices = @transform_0, window_bounds = array<i64: 32>}, {transform_indices = @transform_1, window_bounds = array<i64: 4>}, {transform_indices = @transform_2, window_bounds = array<i64: 8>}, {transform_indices = @transform_3, window_bounds = array<i64: 1, 4, 2, 128>}, {transform_indices = @transform_4, window_bounds = array<i64: 1, 4, 2, 128>}]} {
    %c1_i32 = arith.constant 1 : i32
    %0 = arith.muli %arg0, %c1_i32 : i32
    %c0_i32 = arith.constant 0 : i32
    %c1_i32_0 = arith.constant 1 : i32
    %1 = arith.muli %c0_i32, %c1_i32_0 : i32
    %c0_i32_1 = arith.constant 0 : i32
    %2 = arith.addi %c0_i32_1, %1 : i32
    %3 = arith.addi %0, %2 : i32
    %c16_i32 = arith.constant 16 : i32
    %4 = arith.muli %3, %c16_i32 : i32
    %c0_i32_2 = arith.constant 0 : i32
    %5 = arith.addi %4, %c0_i32_2 : i32
    %6 = arith.index_cast %5 : i32 to index
    %7 = memref.load %arg2[%6] : memref<32xf32, #tpu.memory_space<smem>>
    %8 = arith.index_cast %2 : i32 to index
    %c0 = arith.constant 0 : index
    %c0_3 = arith.constant 0 : index
    %c0_4 = arith.constant 0 : index
    %9 = vector.load %arg5[%8, %c0, %c0_3, %c0_4] : memref<1x4x2x128xf32, #tpu.memory_space<vmem>>, vector<1x1x2x128xf32>
    %10 = vector.shape_cast %9 : vector<1x1x2x128xf32> to vector<2x128xf32>
    %11 = vector.broadcast %7 : f32 to vector<2x128xf32>
    %12 = arith.mulf %11, %10 : vector<2x128xf32>
    %c0_i32_5 = arith.constant 0 : i32
    %13 = arith.addi %4, %c0_i32_5 : i32
    %c1_i32_6 = arith.constant 1 : i32
    %14 = arith.addi %13, %c1_i32_6 : i32
    %15 = arith.index_cast %14 : i32 to index
    %16 = memref.load %arg2[%15] : memref<32xf32, #tpu.memory_space<smem>>
    %17 = arith.index_cast %2 : i32 to index
    %c1 = arith.constant 1 : index
    %c0_7 = arith.constant 0 : index
    %c0_8 = arith.constant 0 : index
    %18 = vector.load %arg5[%17, %c1, %c0_7, %c0_8] : memref<1x4x2x128xf32, #tpu.memory_space<vmem>>, vector<1x1x2x128xf32>
    %19 = vector.shape_cast %18 : vector<1x1x2x128xf32> to vector<2x128xf32>
    %20 = vector.broadcast %16 : f32 to vector<2x128xf32>
    %21 = arith.mulf %20, %19 : vector<2x128xf32>
    %22 = arith.addf %12, %21 : vector<2x128xf32>
    %c0_i32_9 = arith.constant 0 : i32
    %23 = arith.addi %4, %c0_i32_9 : i32
    %c2_i32 = arith.constant 2 : i32
    %24 = arith.addi %23, %c2_i32 : i32
    %25 = arith.index_cast %24 : i32 to index
    %26 = memref.load %arg2[%25] : memref<32xf32, #tpu.memory_space<smem>>
    %27 = arith.index_cast %2 : i32 to index
    %c2 = arith.constant 2 : index
    %c0_10 = arith.constant 0 : index
    %c0_11 = arith.constant 0 : index
    %28 = vector.load %arg5[%27, %c2, %c0_10, %c0_11] : memref<1x4x2x128xf32, #tpu.memory_space<vmem>>, vector<1x1x2x128xf32>
    %29 = vector.shape_cast %28 : vector<1x1x2x128xf32> to vector<2x128xf32>
    %30 = vector.broadcast %26 : f32 to vector<2x128xf32>
    %31 = arith.mulf %30, %29 : vector<2x128xf32>
    %32 = arith.addf %22, %31 : vector<2x128xf32>
    %c0_i32_12 = arith.constant 0 : i32
    %33 = arith.addi %4, %c0_i32_12 : i32
    %c3_i32 = arith.constant 3 : i32
    %34 = arith.addi %33, %c3_i32 : i32
    %35 = arith.index_cast %34 : i32 to index
    %36 = memref.load %arg2[%35] : memref<32xf32, #tpu.memory_space<smem>>
    %37 = arith.index_cast %2 : i32 to index
    %c3 = arith.constant 3 : index
    %c0_13 = arith.constant 0 : index
    %c0_14 = arith.constant 0 : index
    %38 = vector.load %arg5[%37, %c3, %c0_13, %c0_14] : memref<1x4x2x128xf32, #tpu.memory_space<vmem>>, vector<1x1x2x128xf32>
    %39 = vector.shape_cast %38 : vector<1x1x2x128xf32> to vector<2x128xf32>
    %40 = vector.broadcast %36 : f32 to vector<2x128xf32>
    %41 = arith.mulf %40, %39 : vector<2x128xf32>
    %42 = arith.addf %32, %41 : vector<2x128xf32>
    %c0_15 = arith.constant 0 : index
    %43 = memref.load %arg3[%c0_15] : memref<4xf32, #tpu.memory_space<smem>>
    %44 = vector.broadcast %43 : f32 to vector<2x128xf32>
    %45 = arith.addf %42, %44 : vector<2x128xf32>
    %46 = math.tanh %45 : vector<2x128xf32>
    %c4_i32 = arith.constant 4 : i32
    %47 = arith.muli %3, %c4_i32 : i32
    %c0_i32_16 = arith.constant 0 : i32
    %48 = arith.addi %47, %c0_i32_16 : i32
    %49 = arith.index_cast %48 : i32 to index
    %50 = memref.load %arg4[%49] : memref<8xf32, #tpu.memory_space<smem>>
    %51 = vector.broadcast %50 : f32 to vector<2x128xf32>
    %52 = arith.addf %46, %51 : vector<2x128xf32>
    %53 = arith.index_cast %2 : i32 to index
    %c0_17 = arith.constant 0 : index
    %c0_18 = arith.constant 0 : index
    %c0_19 = arith.constant 0 : index
    %54 = vector.load %arg6[%53, %c0_17, %c0_18, %c0_19] : memref<1x4x2x128xf32, #tpu.memory_space<vmem>>, vector<1x1x2x128xf32>
    %55 = vector.shape_cast %54 : vector<1x1x2x128xf32> to vector<2x128xf32>
    %56 = vector.shape_cast %52 : vector<2x128xf32> to vector<1x1x2x128xf32>
    tpu.vector_store %arg6[%53, %c0_17, %c0_18, %c0_19], %56 {strides = array<i32>} : memref<1x4x2x128xf32, #tpu.memory_space<vmem>>, vector<1x1x2x128xf32>,
    %c4_i32_20 = arith.constant 4 : i32
    %57 = arith.addi %4, %c4_i32_20 : i32
    %58 = arith.index_cast %57 : i32 to index
    %59 = memref.load %arg2[%58] : memref<32xf32, #tpu.memory_space<smem>>
    %60 = arith.index_cast %2 : i32 to index
    %c0_21 = arith.constant 0 : index
    %c0_22 = arith.constant 0 : index
    %c0_23 = arith.constant 0 : index
    %61 = vector.load %arg5[%60, %c0_21, %c0_22, %c0_23] : memref<1x4x2x128xf32, #tpu.memory_space<vmem>>, vector<1x1x2x128xf32>
    %62 = vector.shape_cast %61 : vector<1x1x2x128xf32> to vector<2x128xf32>
    %63 = vector.broadcast %59 : f32 to vector<2x128xf32>
    %64 = arith.mulf %63, %62 : vector<2x128xf32>
    %c4_i32_24 = arith.constant 4 : i32
    %65 = arith.addi %4, %c4_i32_24 : i32
    %c1_i32_25 = arith.constant 1 : i32
    %66 = arith.addi %65, %c1_i32_25 : i32
    %67 = arith.index_cast %66 : i32 to index
    %68 = memref.load %arg2[%67] : memref<32xf32, #tpu.memory_space<smem>>
    %69 = arith.index_cast %2 : i32 to index
    %c1_26 = arith.constant 1 : index
    %c0_27 = arith.constant 0 : index
    %c0_28 = arith.constant 0 : index
    %70 = vector.load %arg5[%69, %c1_26, %c0_27, %c0_28] : memref<1x4x2x128xf32, #tpu.memory_space<vmem>>, vector<1x1x2x128xf32>
    %71 = vector.shape_cast %70 : vector<1x1x2x128xf32> to vector<2x128xf32>
    %72 = vector.broadcast %68 : f32 to vector<2x128xf32>
    %73 = arith.mulf %72, %71 : vector<2x128xf32>
    %74 = arith.addf %64, %73 : vector<2x128xf32>
    %c4_i32_29 = arith.constant 4 : i32
    %75 = arith.addi %4, %c4_i32_29 : i32
    %c2_i32_30 = arith.constant 2 : i32
    %76 = arith.addi %75, %c2_i32_30 : i32
    %77 = arith.index_cast %76 : i32 to index
    %78 = memref.load %arg2[%77] : memref<32xf32, #tpu.memory_space<smem>>
    %79 = arith.index_cast %2 : i32 to index
    %c2_31 = arith.constant 2 : index
    %c0_32 = arith.constant 0 : index
    %c0_33 = arith.constant 0 : index
    %80 = vector.load %arg5[%79, %c2_31, %c0_32, %c0_33] : memref<1x4x2x128xf32, #tpu.memory_space<vmem>>, vector<1x1x2x128xf32>
    %81 = vector.shape_cast %80 : vector<1x1x2x128xf32> to vector<2x128xf32>
    %82 = vector.broadcast %78 : f32 to vector<2x128xf32>
    %83 = arith.mulf %82, %81 : vector<2x128xf32>
    %84 = arith.addf %74, %83 : vector<2x128xf32>
    %c4_i32_34 = arith.constant 4 : i32
    %85 = arith.addi %4, %c4_i32_34 : i32
    %c3_i32_35 = arith.constant 3 : i32
    %86 = arith.addi %85, %c3_i32_35 : i32
    %87 = arith.index_cast %86 : i32 to index
    %88 = memref.load %arg2[%87] : memref<32xf32, #tpu.memory_space<smem>>
    %89 = arith.index_cast %2 : i32 to index
    %c3_36 = arith.constant 3 : index
    %c0_37 = arith.constant 0 : index
    %c0_38 = arith.constant 0 : index
    %90 = vector.load %arg5[%89, %c3_36, %c0_37, %c0_38] : memref<1x4x2x128xf32, #tpu.memory_space<vmem>>, vector<1x1x2x128xf32>
    %91 = vector.shape_cast %90 : vector<1x1x2x128xf32> to vector<2x128xf32>
    %92 = vector.broadcast %88 : f32 to vector<2x128xf32>
    %93 = arith.mulf %92, %91 : vector<2x128xf32>
    %94 = arith.addf %84, %93 : vector<2x128xf32>
    %c1_39 = arith.constant 1 : index
    %95 = memref.load %arg3[%c1_39] : memref<4xf32, #tpu.memory_space<smem>>
    %96 = vector.broadcast %95 : f32 to vector<2x128xf32>
    %97 = arith.addf %94, %96 : vector<2x128xf32>
    %98 = math.tanh %97 : vector<2x128xf32>
    %c4_i32_40 = arith.constant 4 : i32
    %99 = arith.muli %3, %c4_i32_40 : i32
    %c1_i32_41 = arith.constant 1 : i32
    %100 = arith.addi %99, %c1_i32_41 : i32
    %101 = arith.index_cast %100 : i32 to index
    %102 = memref.load %arg4[%101] : memref<8xf32, #tpu.memory_space<smem>>
    %103 = vector.broadcast %102 : f32 to vector<2x128xf32>
    %104 = arith.addf %98, %103 : vector<2x128xf32>
    %105 = arith.index_cast %2 : i32 to index
    %c1_42 = arith.constant 1 : index
    %c0_43 = arith.constant 0 : index
    %c0_44 = arith.constant 0 : index
    %106 = vector.load %arg6[%105, %c1_42, %c0_43, %c0_44] : memref<1x4x2x128xf32, #tpu.memory_space<vmem>>, vector<1x1x2x128xf32>
    %107 = vector.shape_cast %106 : vector<1x1x2x128xf32> to vector<2x128xf32>
    %108 = vector.shape_cast %104 : vector<2x128xf32> to vector<1x1x2x128xf32>
    tpu.vector_store %arg6[%105, %c1_42, %c0_43, %c0_44], %108 {strides = array<i32>} : memref<1x4x2x128xf32, #tpu.memory_space<vmem>>, vector<1x1x2x128xf32>,
    %c8_i32 = arith.constant 8 : i32
    %109 = arith.addi %4, %c8_i32 : i32
    %110 = arith.index_cast %109 : i32 to index
    %111 = memref.load %arg2[%110] : memref<32xf32, #tpu.memory_space<smem>>
    %112 = arith.index_cast %2 : i32 to index
    %c0_45 = arith.constant 0 : index
    %c0_46 = arith.constant 0 : index
    %c0_47 = arith.constant 0 : index
    %113 = vector.load %arg5[%112, %c0_45, %c0_46, %c0_47] : memref<1x4x2x128xf32, #tpu.memory_space<vmem>>, vector<1x1x2x128xf32>
    %114 = vector.shape_cast %113 : vector<1x1x2x128xf32> to vector<2x128xf32>
    %115 = vector.broadcast %111 : f32 to vector<2x128xf32>
    %116 = arith.mulf %115, %114 : vector<2x128xf32>
    %c8_i32_48 = arith.constant 8 : i32
    %117 = arith.addi %4, %c8_i32_48 : i32
    %c1_i32_49 = arith.constant 1 : i32
    %118 = arith.addi %117, %c1_i32_49 : i32
    %119 = arith.index_cast %118 : i32 to index
    %120 = memref.load %arg2[%119] : memref<32xf32, #tpu.memory_space<smem>>
    %121 = arith.index_cast %2 : i32 to index
    %c1_50 = arith.constant 1 : index
    %c0_51 = arith.constant 0 : index
    %c0_52 = arith.constant 0 : index
    %122 = vector.load %arg5[%121, %c1_50, %c0_51, %c0_52] : memref<1x4x2x128xf32, #tpu.memory_space<vmem>>, vector<1x1x2x128xf32>
    %123 = vector.shape_cast %122 : vector<1x1x2x128xf32> to vector<2x128xf32>
    %124 = vector.broadcast %120 : f32 to vector<2x128xf32>
    %125 = arith.mulf %124, %123 : vector<2x128xf32>
    %126 = arith.addf %116, %125 : vector<2x128xf32>
    %c8_i32_53 = arith.constant 8 : i32
    %127 = arith.addi %4, %c8_i32_53 : i32
    %c2_i32_54 = arith.constant 2 : i32
    %128 = arith.addi %127, %c2_i32_54 : i32
    %129 = arith.index_cast %128 : i32 to index
    %130 = memref.load %arg2[%129] : memref<32xf32, #tpu.memory_space<smem>>
    %131 = arith.index_cast %2 : i32 to index
    %c2_55 = arith.constant 2 : index
    %c0_56 = arith.constant 0 : index
    %c0_57 = arith.constant 0 : index
    %132 = vector.load %arg5[%131, %c2_55, %c0_56, %c0_57] : memref<1x4x2x128xf32, #tpu.memory_space<vmem>>, vector<1x1x2x128xf32>
    %133 = vector.shape_cast %132 : vector<1x1x2x128xf32> to vector<2x128xf32>
    %134 = vector.broadcast %130 : f32 to vector<2x128xf32>
    %135 = arith.mulf %134, %133 : vector<2x128xf32>
    %136 = arith.addf %126, %135 : vector<2x128xf32>
    %c8_i32_58 = arith.constant 8 : i32
    %137 = arith.addi %4, %c8_i32_58 : i32
    %c3_i32_59 = arith.constant 3 : i32
    %138 = arith.addi %137, %c3_i32_59 : i32
    %139 = arith.index_cast %138 : i32 to index
    %140 = memref.load %arg2[%139] : memref<32xf32, #tpu.memory_space<smem>>
    %141 = arith.index_cast %2 : i32 to index
    %c3_60 = arith.constant 3 : index
    %c0_61 = arith.constant 0 : index
    %c0_62 = arith.constant 0 : index
    %142 = vector.load %arg5[%141, %c3_60, %c0_61, %c0_62] : memref<1x4x2x128xf32, #tpu.memory_space<vmem>>, vector<1x1x2x128xf32>
    %143 = vector.shape_cast %142 : vector<1x1x2x128xf32> to vector<2x128xf32>
    %144 = vector.broadcast %140 : f32 to vector<2x128xf32>
    %145 = arith.mulf %144, %143 : vector<2x128xf32>
    %146 = arith.addf %136, %145 : vector<2x128xf32>
    %c2_63 = arith.constant 2 : index
    %147 = memref.load %arg3[%c2_63] : memref<4xf32, #tpu.memory_space<smem>>
    %148 = vector.broadcast %147 : f32 to vector<2x128xf32>
    %149 = arith.addf %146, %148 : vector<2x128xf32>
    %150 = math.tanh %149 : vector<2x128xf32>
    %c4_i32_64 = arith.constant 4 : i32
    %151 = arith.muli %3, %c4_i32_64 : i32
    %c2_i32_65 = arith.constant 2 : i32
    %152 = arith.addi %151, %c2_i32_65 : i32
    %153 = arith.index_cast %152 : i32 to index
    %154 = memref.load %arg4[%153] : memref<8xf32, #tpu.memory_space<smem>>
    %155 = vector.broadcast %154 : f32 to vector<2x128xf32>
    %156 = arith.addf %150, %155 : vector<2x128xf32>
    %157 = arith.index_cast %2 : i32 to index
    %c2_66 = arith.constant 2 : index
    %c0_67 = arith.constant 0 : index
    %c0_68 = arith.constant 0 : index
    %158 = vector.load %arg6[%157, %c2_66, %c0_67, %c0_68] : memref<1x4x2x128xf32, #tpu.memory_space<vmem>>, vector<1x1x2x128xf32>
    %159 = vector.shape_cast %158 : vector<1x1x2x128xf32> to vector<2x128xf32>
    %160 = vector.shape_cast %156 : vector<2x128xf32> to vector<1x1x2x128xf32>
    tpu.vector_store %arg6[%157, %c2_66, %c0_67, %c0_68], %160 {strides = array<i32>} : memref<1x4x2x128xf32, #tpu.memory_space<vmem>>, vector<1x1x2x128xf32>,
    %c12_i32 = arith.constant 12 : i32
    %161 = arith.addi %4, %c12_i32 : i32
    %162 = arith.index_cast %161 : i32 to index
    %163 = memref.load %arg2[%162] : memref<32xf32, #tpu.memory_space<smem>>
    %164 = arith.index_cast %2 : i32 to index
    %c0_69 = arith.constant 0 : index
    %c0_70 = arith.constant 0 : index
    %c0_71 = arith.constant 0 : index
    %165 = vector.load %arg5[%164, %c0_69, %c0_70, %c0_71] : memref<1x4x2x128xf32, #tpu.memory_space<vmem>>, vector<1x1x2x128xf32>
    %166 = vector.shape_cast %165 : vector<1x1x2x128xf32> to vector<2x128xf32>
    %167 = vector.broadcast %163 : f32 to vector<2x128xf32>
    %168 = arith.mulf %167, %166 : vector<2x128xf32>
    %c12_i32_72 = arith.constant 12 : i32
    %169 = arith.addi %4, %c12_i32_72 : i32
    %c1_i32_73 = arith.constant 1 : i32
    %170 = arith.addi %169, %c1_i32_73 : i32
    %171 = arith.index_cast %170 : i32 to index
    %172 = memref.load %arg2[%171] : memref<32xf32, #tpu.memory_space<smem>>
    %173 = arith.index_cast %2 : i32 to index
    %c1_74 = arith.constant 1 : index
    %c0_75 = arith.constant 0 : index
    %c0_76 = arith.constant 0 : index
    %174 = vector.load %arg5[%173, %c1_74, %c0_75, %c0_76] : memref<1x4x2x128xf32, #tpu.memory_space<vmem>>, vector<1x1x2x128xf32>
    %175 = vector.shape_cast %174 : vector<1x1x2x128xf32> to vector<2x128xf32>
    %176 = vector.broadcast %172 : f32 to vector<2x128xf32>
    %177 = arith.mulf %176, %175 : vector<2x128xf32>
    %178 = arith.addf %168, %177 : vector<2x128xf32>
    %c12_i32_77 = arith.constant 12 : i32
    %179 = arith.addi %4, %c12_i32_77 : i32
    %c2_i32_78 = arith.constant 2 : i32
    %180 = arith.addi %179, %c2_i32_78 : i32
    %181 = arith.index_cast %180 : i32 to index
    %182 = memref.load %arg2[%181] : memref<32xf32, #tpu.memory_space<smem>>
    %183 = arith.index_cast %2 : i32 to index
    %c2_79 = arith.constant 2 : index
    %c0_80 = arith.constant 0 : index
    %c0_81 = arith.constant 0 : index
    %184 = vector.load %arg5[%183, %c2_79, %c0_80, %c0_81] : memref<1x4x2x128xf32, #tpu.memory_space<vmem>>, vector<1x1x2x128xf32>
    %185 = vector.shape_cast %184 : vector<1x1x2x128xf32> to vector<2x128xf32>
    %186 = vector.broadcast %182 : f32 to vector<2x128xf32>
    %187 = arith.mulf %186, %185 : vector<2x128xf32>
    %188 = arith.addf %178, %187 : vector<2x128xf32>
    %c12_i32_82 = arith.constant 12 : i32
    %189 = arith.addi %4, %c12_i32_82 : i32
    %c3_i32_83 = arith.constant 3 : i32
    %190 = arith.addi %189, %c3_i32_83 : i32
    %191 = arith.index_cast %190 : i32 to index
    %192 = memref.load %arg2[%191] : memref<32xf32, #tpu.memory_space<smem>>
    %193 = arith.index_cast %2 : i32 to index
    %c3_84 = arith.constant 3 : index
    %c0_85 = arith.constant 0 : index
    %c0_86 = arith.constant 0 : index
    %194 = vector.load %arg5[%193, %c3_84, %c0_85, %c0_86] : memref<1x4x2x128xf32, #tpu.memory_space<vmem>>, vector<1x1x2x128xf32>
    %195 = vector.shape_cast %194 : vector<1x1x2x128xf32> to vector<2x128xf32>
    %196 = vector.broadcast %192 : f32 to vector<2x128xf32>
    %197 = arith.mulf %196, %195 : vector<2x128xf32>
    %198 = arith.addf %188, %197 : vector<2x128xf32>
    %c3_87 = arith.constant 3 : index
    %199 = memref.load %arg3[%c3_87] : memref<4xf32, #tpu.memory_space<smem>>
    %200 = vector.broadcast %199 : f32 to vector<2x128xf32>
    %201 = arith.addf %198, %200 : vector<2x128xf32>
    %202 = math.tanh %201 : vector<2x128xf32>
    %c4_i32_88 = arith.constant 4 : i32
    %203 = arith.muli %3, %c4_i32_88 : i32
    %c3_i32_89 = arith.constant 3 : i32
    %204 = arith.addi %203, %c3_i32_89 : i32
    %205 = arith.index_cast %204 : i32 to index
    %206 = memref.load %arg4[%205] : memref<8xf32, #tpu.memory_space<smem>>
    %207 = vector.broadcast %206 : f32 to vector<2x128xf32>
    %208 = arith.addf %202, %207 : vector<2x128xf32>
    %209 = arith.index_cast %2 : i32 to index
    %c3_90 = arith.constant 3 : index
    %c0_91 = arith.constant 0 : index
    %c0_92 = arith.constant 0 : index
    %210 = vector.load %arg6[%209, %c3_90, %c0_91, %c0_92] : memref<1x4x2x128xf32, #tpu.memory_space<vmem>>, vector<1x1x2x128xf32>
    %211 = vector.shape_cast %210 : vector<1x1x2x128xf32> to vector<2x128xf32>
    %212 = vector.shape_cast %208 : vector<2x128xf32> to vector<1x1x2x128xf32>
    tpu.vector_store %arg6[%209, %c3_90, %c0_91, %c0_92], %212 {strides = array<i32>} : memref<1x4x2x128xf32, #tpu.memory_space<vmem>>, vector<1x1x2x128xf32>,
    %c1_i32_93 = arith.constant 1 : i32
    return
  }
  func.func @transform_0(%arg0: i32, %arg1: i32) -> i32 {
    %c0_i32 = arith.constant 0 : i32
    %c0_i32_0 = arith.constant 0 : i32
    return %c0_i32 : i32
  }
  func.func @transform_1(%arg0: i32, %arg1: i32) -> i32 {
    %c0_i32 = arith.constant 0 : i32
    %c0_i32_0 = arith.constant 0 : i32
    return %c0_i32 : i32
  }
  func.func @transform_2(%arg0: i32, %arg1: i32) -> i32 {
    %c0_i32 = arith.constant 0 : i32
    %c0_i32_0 = arith.constant 0 : i32
    return %c0_i32 : i32
  }
  func.func @transform_3(%arg0: i32, %arg1: i32) -> (i32, i32, i32, i32) {
    %c0_i32 = arith.constant 0 : i32
    %c0_i32_0 = arith.constant 0 : i32
    %c0_i32_1 = arith.constant 0 : i32
    return %arg0, %c0_i32, %c0_i32_0, %arg1 : i32, i32, i32, i32
  }
  func.func @transform_4(%arg0: i32, %arg1: i32) -> (i32, i32, i32, i32) {
    %c0_i32 = arith.constant 0 : i32
    %c0_i32_0 = arith.constant 0 : i32
    %c0_i32_1 = arith.constant 0 : i32
    return %arg0, %c0_i32, %c0_i32_0, %arg1 : i32, i32, i32, i32
  }
}

</mosaic_0001>

<bundles_post_ra>
// kernel: cfg_denoiser.1
= control target key start
LH: loop header
LB: loop body
LE: loop exit
PB: predicated region body
PF: predicated region fallthrough
CT: control target
= control target key end

     0   :  { %9 = vsyncpa [#allocation3], 0  ;;  %s892_s0 = inlined_call_operand.vmem [shape: f32[32], index: 0, kind: input, shape index: {}]   ;;  %s893_s1 = inlined_call_operand.vmem [shape: f32[4], index: 1, kind: input, shape index: {}]   ;;  %s894_s2 = inlined_call_operand.vmem [shape: f32[8], index: 2, kind: input, shape index: {}]   ;;  %s895_s3 = inlined_call_operand.vmem [shape: f32[2,4,2,128], index: 3, kind: input, shape index: {}]   ;;  %s896_s4 = inlined_call_operand.vmem [shape: f32[2,4,2,128], index: 4, kind: output, shape index: {}]  }
   0x1   :  { %10 = vsyncpa [#allocation5], 0  ;;  %s724_s15 = smov 0   ;;  %s726_s16 = smov 0  }
   0x2   :  { %s728_s17 = smov 0  }
   0x3 LB: > { %s176_s20 = sshll.u32 %s893_s1, 4  ;;  %s517_s21 = sadd.s32 4294967295, %s694_s17   ;;  %s694_s17 = sphi %s728_s17, %s16_s17   ;;  %s690_s16 = sphi %s726_s16, %s907_s16   ;;  %s686_s15 = sphi %s724_s15, %s906_s15   ;;  %s177_s20 = int_to_ptr.vmem [resolvable:$true] %s176_s20 }
   0x4   : > { %p519_p0 = scmp.ge.s32.totalorder %s694_s17, 1  ;;  %p152_p1 = scmp.lt.s32.totalorder %s694_s17, 3 }
   0x5   : > { %p745_p2 = scmp.eq.s32.totalorder %s517_s21, 0  ;;  %s28_s24 = sadd.s32 1, %s690_s16 }
   0x6   : > { %p749_p3 = pnand %p519_p0, %p152_p1  ;;  %s165_s27 = sshll.u32 %s892_s0, 4  ;;  %s166_s27 = int_to_ptr.vmem [resolvable:$true] %s165_s27 }
   0x7   : > { %s900_s22 = scalar_select %p745_p2, 1, 0 }
   0x8   : > { %s901_s23 = scalar_select %p749_p3, 1, 0 }
   0x9   : > { %p568_p4 = pneg %p749_p3  ;;  %p765_p6 = scmp.ge.s32.totalorder %s28_s24, 2 }
   0xa   : > { %s187_s6 = sshll.u32 %s894_s2, 4  ;;  %s619_s7 = scalar_lea.vmem %s177_s20, 16  ;;  %s188_s6 = int_to_ptr.vmem [resolvable:$true] %s187_s6 }
   0xb   : > { %p761_p5 = pnand %p745_p2, %p568_p4  ;;  %p620_p7 = scmp.ne.s32.totalorder %s177_s20, %s619_s7 }
   0xc   : > { %p627_p11 = scmp.lt.s32.totalorder %s177_s20, %s177_s20  ;;  %p628_p12 = scmp.lt.s32.totalorder %s619_s7, %s619_s7 }
   0xd   : > { %p621_p8 = pneg %p761_p5 }
   0xe   : > { %p629_p13 = por %p628_p12, %p627_p11 }
   0xf   : > { %p622_p9 = pnand %p621_p8, %p620_p7 }
  0x11   : > { %p623_p10 = pneg %p622_p9 }
  0x13   : > { %p630_p0 = pnand %p629_p13, %p623_p10 }
  0x15   : > { %633 = shalt.err (!%p630_p0)
}
  0x16   : > { %s696_s8 = smov [#allocation4]   ;;  %s909_s24 = smov (%p765_p6, %s28_s24), 0 }
  0x17   : > { %574 = dma.vmem_to_smem (!%p761_p5), %s177_s20, 16, %s696_s8, [#allocation5]  }
  0x18   : > { %s634_s9 = scalar_lea.vmem %s166_s27, 16  ;;  %p642_p9 = scmp.lt.s32.totalorder %s166_s27, %s166_s27 }
  0x19   : > { %p635_p1 = scmp.ne.s32.totalorder %s166_s27, %s634_s9  ;;  %p643_p2 = scmp.lt.s32.totalorder %s634_s9, %s634_s9 }
  0x1b   : > { %p637_p4 = pnand %p635_p1, %p621_p8  ;;  %p644_p11 = por %p643_p2, %p642_p9 }
  0x1d   : > { %p638_p7 = pneg %p637_p4 }
  0x1f   : > { %p645_p10 = pnand %p644_p11, %p638_p7 }
  0x21   : > { %648 = shalt.err (!%p645_p10)
}
  0x22   : > { %s697_s10 = smov [#allocation2]   ;;  %s649_s11 = scalar_lea.vmem %s188_s6, 16 }
  0x23   : > { %571 = dma.vmem_to_smem (!%p761_p5), %s166_s27, 16, %s697_s10, [#allocation3]  }
  0x24   : > { %p650_p6 = scmp.ne.s32.totalorder %s188_s6, %s649_s11  ;;  %p657_p0 = scmp.lt.s32.totalorder %s188_s6, %s188_s6 }
  0x25   : > { %p658_p1 = scmp.lt.s32.totalorder %s649_s11, %s649_s11 }
  0x26   : > { %p652_p12 = pnand %p650_p6, %p621_p8 }
  0x27   : > { %p659_p4 = por %p658_p1, %p657_p0 }
  0x28   : > { %p653_p13 = pneg %p652_p12 }
  0x2a   : > { %p660_p3 = pnand %p659_p4, %p653_p13 }
  0x2c   : > { %663 = shalt.err (!%p660_p3)
}
  0x2d   : > { %s698_s12 = smov [#allocation6]   ;;  %p904_p2 = scmp.ne.s32.totalorder %s901_s23, 0 }
  0x2e   : > { %577 = dma.vmem_to_smem (!%p761_p5), %s188_s6, 16, %s698_s12, [#allocation5]  }
  0x2f   : > { %211 = sbr.rel (%p904_p2) target bundleno = 111 (0x6f), region = 36  ;;  %p905_p7 = scmp.ne.s32.totalorder (!%p904_p2), %s900_s22, 0 }
  0x34   : > { %677 = dma.done.wait (%p905_p7), [#allocation3], 16  }
  0x35   : > { %679 = vsyncadd (%p905_p7), [#allocation3], 4294967280 }
  0x36   : > { %681 = dma.done.wait (%p905_p7), [#allocation5], 32  }
  0x37   : > { %683 = vsyncadd (%p905_p7), [#allocation5], 4294967264 }
  0x38   : > { %225 = sfence }
  0x39   : > { %p252_p3 = scmp.lt.s32.totalorder %s686_s15, 1  ;;  %s805_s13 = sshll.u32 %s686_s15, 4 }
  0x3a   : > { %s269_s14 = sld [smem:[#allocation2 + %s805_s13]]  ;;  %s273_s18 = sadd.s32 1, %s805_s13 }
  0x3b   : > { %s810_s19 = scalar_select %p252_p3, %s686_s15, 1 }
  0x3c   : > { %s274_s20 = sld [smem:[#allocation2 + %s273_s18]]  ;;  %s280_s21 = sadd.s32 2, %s805_s13 }
  0x3d   : > { %s554_s22 = sshll.u32 %s810_s19, 3  ;;  %s281_s23 = sld [smem:[#allocation2 + %s280_s21]] }
  0x3e   : > { %s819_s27 = scalar_lea.vmem %s895_s3, %s554_s22  ;;  %s287_s28 = sadd.s32 3, %s805_s13 }
  0x3f   : > { %v270_v0 = vld [vmem:[%s819_s27] sm:$0x3]  ;;  %v533_v2 = vld [vmem:[%s819_s27 + $0x2] sm:$0x3]  ;;  %s824_s29 = sld [smem:[#allocation4]]  ;;  %s303_s5 = sadd.s32 4, %s805_s13 }
  0x40   : > { %v271_v1 = vstv %s269_s14  ;;  %v534_v4 = vld [vmem:[%s819_s27 + $0x4] sm:$0x3]  ;;  %s288_s30 = sld [smem:[#allocation2 + %s287_s28]]  ;;  %s308_s7 = sadd.s32 5, %s805_s13  ;;  %v535_v10 = vld [vmem:[%s819_s27 + $0x6] sm:$0x3] }
  0x41   : > { %v272_v3 = vmul.f32 %v271_v1, %v270_v0  ;;  %s304_s6 = sld [smem:[#allocation2 + %s303_s5]]  ;;  %s314_s9 = sadd.s32 6, %s805_s13  ;;  %v305_v13 = vld [vmem:[%s819_s27] sm:$0x3]  ;;  %v537_v15 = vld [vmem:[%s819_s27 + $0x2] sm:$0x3] }
  0x42   : > { %v277_v5 = vstv %s274_s20  ;;  %s309_s8 = sld [smem:[#allocation2 + %s308_s7]]  ;;  %s320_s11 = sadd.s32 7, %s805_s13  ;;  %v538_v18 = vld [vmem:[%s819_s27 + $0x4] sm:$0x3]  ;;  %v539_v22 = vld [vmem:[%s819_s27 + $0x6] sm:$0x3] }
  0x43   : > { %v278_v6 = vmul.f32 %v533_v2, %v277_v5  ;;  %v284_v7 = vstv %s281_s23  ;;  %s315_s10 = sld [smem:[#allocation2 + %s314_s9]]  ;;  %s835_s14 = sshll.u32 %s686_s15, 2  ;;  %v338_v30 = vld [vmem:[%s819_s27] sm:$0x3]  ;;  %v542_v31 = vld [vmem:[%s819_s27 + $0x2] sm:$0x3] }
  0x44   : > { %v285_v8 = vmul.f32 %v534_v4, %v284_v7  ;;  %s832_s12 = sld [smem:[#allocation2 + %s320_s11]]  ;;  %s336_s18 = sadd.s32 8, %s805_s13  ;;  %v543_v34 = vld [vmem:[%s819_s27 + $0x4] sm:$0x3]  ;;  %v544_v38 = vld [vmem:[%s819_s27 + $0x6] sm:$0x3] }
  0x45   : > { %v279_v9 = vadd.f32 %v278_v6, %v272_v3  ;;  %s840_s20 = sld [smem:[#allocation4 + $0x1]]  ;;  %s341_s21 = sadd.s32 9, %s805_s13  ;;  %v295_v16 = vstv %s824_s29  ;;  %v371_v47 = vld [vmem:[%s819_s27] sm:$0x3]  ;;  %v547_v48 = vld [vmem:[%s819_s27 + $0x2] sm:$0x3] }
  0x46   : > { %v291_v12 = vstv %s288_s30  ;;  %s845_s23 = sld [smem:[#allocation2 + %s336_s18]]  ;;  %s347_s25 = sadd.s32 10, %s805_s13  ;;  %v548_v51 = vld [vmem:[%s819_s27 + $0x4] sm:$0x3]  ;;  %v549_v55 = vld [vmem:[%s819_s27 + $0x6] sm:$0x3] }
  0x47   : > { %v286_v11 = vadd.f32 %v285_v8, %v279_v9  ;;  %v292_v14 = vmul.f32 %v535_v10, %v291_v12  ;;  %v306_v17 = vstv %s304_s6  ;;  %s342_s15 = sld [smem:[#allocation2 + %s341_s21]]  ;;  %s353_s26 = sadd.s32 11, %s805_s13 }
  0x48   : > { %v307_v20 = vmul.f32 %v306_v17, %v305_v13  ;;  %v311_v21 = vstv %s309_s8  ;;  %s348_s28 = sld [smem:[#allocation2 + %s347_s25]]  ;;  %s369_s30 = sadd.s32 12, %s805_s13 }
  0x49   : > { %v293_v19 = vadd.f32 %v292_v14, %v286_v11  ;;  %v312_v23 = vmul.f32 %v537_v15, %v311_v21  ;;  %v317_v24 = vstv %s315_s10  ;;  %s354_s29 = sld [smem:[#allocation2 + %s353_s26]]  ;;  %s374_s6 = sadd.s32 13, %s805_s13 }
  0x4a   : > { %v318_v26 = vmul.f32 %v538_v18, %v317_v24  ;;  %v323_v27 = vstv %s832_s12  ;;  %s853_s5 = sld [smem:[#allocation6 + %s835_s14]]  ;;  %s380_s8 = sadd.s32 14, %s805_s13 }
  0x4b   : > { %v296_v25 = vadd.f32 %v295_v16, %v293_v19  ;;  %v313_v28 = vadd.f32 %v312_v23, %v307_v20  ;;  %v324_v29 = vmul.f32 %v539_v22, %v323_v27  ;;  %s858_s7 = sld [smem:[#allocation4 + $0x2]]  ;;  %s386_s10 = sadd.s32 15, %s805_s13  ;;  %v327_v35 = vstv %s840_s20 }
  0x4c   : > { %v339_v33 = vstv %s845_s23  ;;  %s370_s9 = sld [smem:[#allocation2 + %s369_s30]]  ;;  %s330_s20 = sadd.s32 1, %s835_s14 }
  0x4d   : > { %611 = vtanh.f32 %v296_v25  ;;  %v319_v32 = vadd.f32 %v318_v26, %v313_v28  ;;  %v340_v36 = vmul.f32 %v339_v33, %v338_v30  ;;  %v344_v37 = vstv %s342_s15  ;;  %s375_s11 = sld [smem:[#allocation2 + %s374_s6]]  ;;  %s267_s15 = scalar_lea.vmem %s896_s4, %s554_s22 }
  0x4e   : > { %v345_v40 = vmul.f32 %v542_v31, %v344_v37  ;;  %v350_v41 = vstv %s348_s28  ;;  %s381_s12 = sld [smem:[#allocation2 + %s380_s8]]  ;;  %s363_s27 = sadd.s32 2, %s835_s14 }
  0x4f   : > { %v325_v39 = vadd.f32 %v324_v29, %v319_v32  ;;  %v351_v42 = vmul.f32 %v543_v34, %v350_v41  ;;  %v356_v43 = vstv %s354_s29  ;;  %s387_s18 = sld [smem:[#allocation2 + %s386_s10]]  ;;  %s396_s28 = sadd.s32 3, %s835_s14 }
  0x50   : > { %v346_v45 = vadd.f32 %v345_v40, %v340_v36  ;;  %v357_v46 = vmul.f32 %v544_v38, %v356_v43  ;;  %s868_s13 = sld [smem:[#allocation4 + $0x3]]  ;;  %v300_v61 = vstv %s853_s5 }
  0x51   : > { %v328_v44 = vadd.f32 %v327_v35, %v325_v39  ;;  %v360_v52 = vstv %s858_s7  ;;  %s331_s21 = sld [smem:[#allocation6 + %s330_s20]] }
  0x52   : > { %v352_v49 = vadd.f32 %v351_v42, %v346_v45  ;;  %v372_v50 = vstv %s370_s9  ;;  %s364_s26 = sld [smem:[#allocation6 + %s363_s27]] }
  0x53   : > { %613 = vtanh.f32 %v328_v44  ;;  %v373_v53 = vmul.f32 %v372_v50, %v371_v47  ;;  %v377_v54 = vstv %s375_s11  ;;  %s397_s29 = sld [smem:[#allocation6 + %s396_s28]] }
  0x54   : > { %v358_v56 = vadd.f32 %v357_v46, %v352_v49  ;;  %v378_v57 = vmul.f32 %v547_v48, %v377_v54  ;;  %v383_v58 = vstv %s381_s12 }
  0x55   : > { %v384_v59 = vmul.f32 %v548_v51, %v383_v58  ;;  %v389_v60 = vstv %s387_s18 }
  0x56   : > { %v361_v62 = vadd.f32 %v360_v52, %v358_v56  ;;  %v379_v63 = vadd.f32 %v378_v57, %v373_v53  ;;  %v390_v0 = vmul.f32 %v549_v55, %v389_v60  ;;  %v393_v4 = vstv %s868_s13 }
  0x57   : > { %v332_v7 = vstv %s331_s21 }
  0x58   : > { %615 = vtanh.f32 %v361_v62  ;;  %v385_v2 = vadd.f32 %v384_v59, %v379_v63  ;;  %v365_v10 = vstv %s364_s26 }
  0x59   : > { %v398_v13 = vstv %s397_s29 }
  0x5a   : > { %v612_v1 = vpop.eup %611  ;;  %v391_v5 = vadd.f32 %v390_v0, %v385_v2 }
  0x5b   : > { %v301_v3 = vadd.f32 %v612_v1, %v300_v61 }
  0x5c   : > { %v394_v6 = vadd.f32 %v393_v4, %v391_v5 }
  0x5d   : > { %302 = vst [vmem:[%s267_s15] sm:$0x3] %v301_v3 }
  0x5e   : > { %617 = vtanh.f32 %v394_v6 }
  0x60   : > { %v614_v8 = vpop.eup %613 }
  0x61   : > { %v333_v9 = vadd.f32 %v614_v8, %v332_v7 }
  0x63   : > { %541 = vst [vmem:[%s267_s15 + $0x2] sm:$0x3] %v333_v9 }
  0x65   : > { %v616_v11 = vpop.eup %615 }
  0x66   : > { %v366_v12 = vadd.f32 %v616_v11, %v365_v10 }
  0x68   : > { %546 = vst [vmem:[%s267_s15 + $0x4] sm:$0x3] %v366_v12 }
  0x6b   : > { %v618_v14 = vpop.eup %617 }
  0x6c   : > { %v399_v15 = vadd.f32 %v618_v14, %v398_v13 }
  0x6e   : > { %551 = vst [vmem:[%s267_s15 + $0x6] sm:$0x3] %v399_v15 }
  0x6f PF: > { %s16_s17 = sadd.s32 1, %s694_s17   ;;  %s906_s15 = smov %s690_s16 }
  0x70   : > { %p13_p5 = scmp.ge.s32.totalorder %s16_s17, 4   ;;  %s907_s16 = smov %s909_s24 }
  0x72   :  { %15 = sbr.rel (!%p13_p5) target bundleno = 3 (0x3), region = 85 }
  0x77   :  { %429 = vsyncpa [#allocation3], 1 }
  0x78   :  { %431 = vsyncpa [#allocation3 + $0x1], 1 }
  0x79   :  { %432 = vsyncpa [#allocation5], 1 }

</bundles_post_ra>
